<compile_context>
chip_gen: v5e
topology: v5e:2x2
jax: 0.10.0
libtpu: 0.0.40
codegen_flags: <defaults>
</compile_context>

<pallas_src>
import jax
import jax.numpy as jnp
from jax.experimental import pallas as pl
from jax.experimental.pallas import tpu as pltpu


def _round_up(x: int, m: int) -> int:
    return ((x + m - 1) // m) * m


def embed_linear_kernel(idx_ref, table_ref, bias_ref, out_ref):
    # idx_ref:   (TILE_N, 1) int32    token indices for this tile
    # table_ref: (V, O_pad)  float32  fused table = emb_table @ W.T (zero-padded cols)
    # bias_ref:  (1, O_pad)  float32  bias (zero-padded cols)
    # out_ref:   (TILE_N, O_pad) float32
    idx = idx_ref[...]                                   # (TILE_N, 1)
    tn = idx.shape[0]
    v = table_ref.shape[0]

    # One-hot row gather fused with the linear layer as a single MXU matmul:
    # (TILE_N, V) @ (V, O_pad) -> (TILE_N, O_pad)
    iota = jax.lax.broadcasted_iota(jnp.int32, (tn, v), 1)
    onehot = (iota == idx).astype(jnp.float32)
    out = jnp.dot(onehot, table_ref[...], preferred_element_type=jnp.float32)
    out_ref[...] = (out + bias_ref[...]).astype(out_ref.dtype)


def model_with_embedding(x_idx, emb_table, w, b, *, tile_n=512):
    """x_idx: (batch, seq) int; emb_table: (V, D); w: (O, D) (PyTorch layout); b: (O,).
    Returns (batch, seq, O) float32."""
    batch, seq = x_idx.shape
    v, d = emb_table.shape
    o = w.shape[0]
    n = batch * seq

    # --- algebraic fusion of Embedding + Linear weight (tiny (V,D)@(D,O), done once) ---
    fused = jnp.dot(emb_table.astype(jnp.float32), w.astype(jnp.float32).T,
                    precision=jax.lax.Precision.HIGHEST)          # (V, O)

    # --- lane-dense output: pad O up to a multiple of 128 lanes ---
    o_pad = _round_up(o, 128)
    if o_pad != o:
        fused = jnp.pad(fused, ((0, 0), (0, o_pad - o)))
        bias = jnp.pad(b.astype(jnp.float32), (0, o_pad - o))
    else:
        bias = b.astype(jnp.float32)
    bias2d = bias.reshape(1, o_pad)

    # --- tile the token dimension (multiple of 8 sublanes); pad N if needed ---
    tn = min(tile_n, _round_up(n, 8))
    n_pad = _round_up(n, tn)
    idx_flat = x_idx.reshape(n).astype(jnp.int32)
    if n_pad != n:
        idx_flat = jnp.pad(idx_flat, (0, n_pad - n))              # pad with index 0 (in range)
    idx_col = idx_flat.reshape(n_pad, 1)

    grid = (n_pad // tn,)
    bytes_accessed = (n_pad * 4) + (v * o_pad * 4) + (o_pad * 4) + (n_pad * o_pad * 4)

    out = pl.pallas_call(
        embed_linear_kernel,
        out_shape=jax.ShapeDtypeStruct((n_pad, o_pad), jnp.float32),
        grid=grid,
        in_specs=[
            pl.BlockSpec((tn, 1), lambda i: (i, 0)),              # per-tile indices
            pl.BlockSpec((v, o_pad), lambda i: (0, 0)),           # fused table, resident
            pl.BlockSpec((1, o_pad), lambda i: (0, 0)),           # bias, resident
        ],
        out_specs=pl.BlockSpec((tn, o_pad), lambda i: (i, 0)),
        compiler_params=pltpu.CompilerParams(
            dimension_semantics=("parallel",),
            vmem_limit_bytes=32 * 1024 * 1024,
        ),
        cost_estimate=pl.CostEstimate(
            flops=2 * n_pad * v * o_pad,
            transcendentals=0,
            bytes_accessed=bytes_accessed,
        ),
    )(idx_col, fused, bias2d)

    return out[:n, :o].reshape(batch, seq, o)


if __name__ == "__main__":
    # Small shapes consistent with the module
    num_embeddings = 16
    embedding_dim = 32
    output_dim = 32
    batch, seq = 2, 8

    key = jax.random.PRNGKey(0)
    k_idx, k_emb, k_w, k_b = jax.random.split(key, 4)

    # Deterministic parameter init (synthetic; mirrors nn.Embedding / nn.Linear shapes)
    emb_table = jax.random.normal(k_emb, (num_embeddings, embedding_dim), jnp.float32)
    w = jax.random.normal(k_w, (output_dim, embedding_dim), jnp.float32) * (
        1.0 / jnp.sqrt(embedding_dim))
    b = jax.random.normal(k_b, (output_dim,), jnp.float32) * 0.01

    x = jax.random.randint(k_idx, (batch, seq), 0, num_embeddings, jnp.int32)

    out = model_with_embedding(x, emb_table, w, b)
    out = jax.block_until_ready(out)

    # Reference check in plain JAX (high-precision matmul to avoid default-precision fuzz)
    emb_x = jnp.take(emb_table, x, axis=0)                        # (B, S, D)
    ref = jnp.einsum("bsd,od->bso", emb_x, w,
                     precision=jax.lax.Precision.HIGHEST) + b

    assert out.shape == (batch, seq, output_dim)
    assert jnp.allclose(out, ref, atol=2e-3, rtol=2e-3)

    print("KERNEL_OK")
</pallas_src>

<mosaic_0001>
module attributes {stable_mosaic.version = 11 : i64} {
  func.func @embed_linear_kernel(%arg0: i32, %arg1: memref<16x1xi32, #tpu.memory_space<vmem>>, %arg2: memref<16x128xf32, #tpu.memory_space<vmem>>, %arg3: memref<1x128xf32, #tpu.memory_space<vmem>>, %arg4: memref<16x128xf32, #tpu.memory_space<vmem>>) attributes {dimension_semantics = [#tpu.dimension_semantics<parallel>], iteration_bounds = array<i64: 1>, scalar_prefetch = 0 : i64, scratch_operands = 0 : i64, tpu.core_type = #tpu.core_type<tc>, window_params = [{transform_indices = @transform_0, window_bounds = array<i64: 16, 1>}, {pipeline_mode = #tpu.pipeline_mode<synchronous>, transform_indices = @transform_1, window_bounds = array<i64: 16, 128>}, {pipeline_mode = #tpu.pipeline_mode<synchronous>, transform_indices = @transform_2, window_bounds = array<i64: 1, 128>}, {transform_indices = @transform_3, window_bounds = array<i64: 16, 128>}]} {
    %c0 = arith.constant 0 : index
    %c0_0 = arith.constant 0 : index
    %0 = vector.load %arg1[%c0, %c0_0] : memref<16x1xi32, #tpu.memory_space<vmem>>, vector<16x1xi32>
    %1 = tpu.iota {dimensions = array<i32: 1>} : vector<16x16xi32>
    %2 = vector.broadcast %0 : vector<16x1xi32> to vector<16x16xi32>
    %3 = arith.cmpi eq, %1, %2 : vector<16x16xi32>
    %4 = arith.extui %3 : vector<16x16xi1> to vector<16x16xi32>
    %5 = arith.sitofp %4 : vector<16x16xi32> to vector<16x16xf32>
    %c0_1 = arith.constant 0 : index
    %c0_2 = arith.constant 0 : index
    %6 = vector.load %arg2[%c0_1, %c0_2] : memref<16x128xf32, #tpu.memory_space<vmem>>, vector<16x128xf32>
    %cst = arith.constant dense<0.000000e+00> : vector<16x128xf32>
    %7 = tpu.matmul %5, %6, %cst {dimension_numbers = #tpu.dot_dimension_numbers<[1], [0], [0], [1], [0, 0, 1, 1], [], []>} : vector<16x16xf32>, vector<16x128xf32>, vector<16x128xf32> -> vector<16x128xf32>
    %c0_3 = arith.constant 0 : index
    %c0_4 = arith.constant 0 : index
    %8 = vector.load %arg3[%c0_3, %c0_4] : memref<1x128xf32, #tpu.memory_space<vmem>>, vector<1x128xf32>
    %9 = vector.broadcast %8 : vector<1x128xf32> to vector<16x128xf32>
    %10 = arith.addf %7, %9 : vector<16x128xf32>
    %c0_5 = arith.constant 0 : index
    %c0_6 = arith.constant 0 : index
    %11 = vector.load %arg4[%c0_5, %c0_6] : memref<16x128xf32, #tpu.memory_space<vmem>>, vector<16x128xf32>
    tpu.vector_store %arg4[%c0_5, %c0_6], %10 {strides = array<i32>} : memref<16x128xf32, #tpu.memory_space<vmem>>, vector<16x128xf32>,
    return
  }
  func.func @transform_0(%arg0: i32) -> (i32, i32) {
    %c0_i32 = arith.constant 0 : i32
    %c0_i32_0 = arith.constant 0 : i32
    return %arg0, %c0_i32 : i32, i32
  }
  func.func @transform_1(%arg0: i32) -> (i32, i32) {
    %c0_i32 = arith.constant 0 : i32
    %c0_i32_0 = arith.constant 0 : i32
    %c0_i32_1 = arith.constant 0 : i32
    return %c0_i32, %c0_i32_0 : i32, i32
  }
  func.func @transform_2(%arg0: i32) -> (i32, i32) {
    %c0_i32 = arith.constant 0 : i32
    %c0_i32_0 = arith.constant 0 : i32
    %c0_i32_1 = arith.constant 0 : i32
    return %c0_i32, %c0_i32_0 : i32, i32
  }
  func.func @transform_3(%arg0: i32) -> (i32, i32) {
    %c0_i32 = arith.constant 0 : i32
    %c0_i32_0 = arith.constant 0 : i32
    return %arg0, %c0_i32 : i32, i32
  }
}

</mosaic_0001>

<bundles_post_ra>
// kernel: tpu_custom_call.1
= control target key start
LH: loop header
LB: loop body
LE: loop exit
PB: predicated region body
PF: predicated region fallthrough
CT: control target
= control target key end

     0   :  { %v126_v2 = vmov 0   ;;  %s169_s0 = inlined_call_operand.vmem [shape: s32[16,1], index: 0, kind: input, shape index: {}]   ;;  %s170_s1 = inlined_call_operand.vmem [shape: f32[16,128], index: 1, kind: input, shape index: {}]   ;;  %s171_s2 = inlined_call_operand.vmem [shape: f32[1,128], index: 2, kind: input, shape index: {}]   ;;  %s172_s3 = inlined_call_operand.hbm [shape: f32[16,128], index: 3, kind: output, shape index: {}]  }
   0x1   :  { %v15_v0 = vld [vmem:[%s169_s0] sm:$0xff]  ;;  %v32_v1 = vld [vmem:[%s170_s1 + $0x8] sm:$0xff]  ;;  %98 = vset.pattern.permute.xlu0 %v126_v2 }
   0x2   :  { %58 = vmatpush.msra.mxu0 %v32_v1 }
   0x3   :  { %8 = vsyncpa [#allocation3], 0  ;;  %20 = vperm.xlu0 %98, %v15_v0   ;;  %91 = vmatpush.msra.mxu1 %v32_v1  ;;  %v16_v3 = vld [vmem:[%s169_s0 + $0x8] sm:$0xff]  ;;  %v31_v4 = vld [vmem:[%s170_s1] sm:$0xff]  ;;  %v17_v5 = vlaneseq  ;;  %vm37_vm0 = vcmask 130048   ;;  %v127_v8 = vmov 0.0  }
   0x4   :  { %59 = vmatpush.msra.mxu0 %v31_v4  ;;  %v99_v12 = vld [vmem:[%s171_s2] ss:$0 sm:$0xff]  ;;  %s128_s1 = smov [#allocation2]   ;;  %s75_s24 = sshll.u32 %s172_s3, 4  ;;  %s76_s24 = int_to_ptr.hbm [resolvable:$true] %s75_s24 }
   0x5   :  { %92 = vmatpush.msra.mxu1 %v31_v4  ;;  %v18_v6 = vand.u32 127, %v17_v5  ;;  %s73_s21 = sshll.u32 %s128_s1, 4  ;;  %s129_s25 = smov 128   ;;  %s74_s21 = int_to_ptr.vmem [resolvable:$true] %s73_s21 }
   0x6   :  { %s130_s26 = smov 8  }
   0xb   :  { %23 = vperm.xlu0 %98, %v16_v3  }
  0x75   :  { %v21_v7 = vpop.permute.xlu0 %20 }
  0x76   :  { %vm25_vm1 = vcmp.eq.s32.totalorder %v18_v6, %v21_v7 }
  0x77   :  { %v87_v9 = vsel %vm25_vm1, 1.0, %v127_v8 }
  0x78   :  { %89 = vmatmul.msk.f32.vlgmr.msra.gmra.mxu0 %vm37_vm0, %v87_v9 }
  0x7d   :  { %v24_v10 = vpop.permute.xlu0 %23 }
  0x7e   :  { %vm26_vm2 = vcmp.eq.s32.totalorder %v18_v6, %v24_v10 }
  0x7f   :  { %v88_v11 = vsel %vm26_vm2, 1.0, %v127_v8 }
  0x80   :  { %90 = vmatmul.msk.f32.vlgmr.msra.gmra.mxu1 %vm37_vm0, %v88_v11 }
  0xf5   :  { %v61_v13 = vpop.f32.mrf.mxu0 }
  0xf6   :  { %v62_v14 = vadd.f32 %v99_v12, %v61_v13 }
  0xf8   :  { %67 = vst [vmem:[#allocation2] sm:$0xff] %v62_v14 }
  0xfd   :  { %v64_v15 = vpop.f32.mrf.mxu1 }
  0xfe   :  { %v65_v16 = vadd.f32 %v99_v12, %v64_v15 }
 0x100   :  { %68 = vst [vmem:[#allocation2 + $0x8] sm:$0xff] %v65_v16 }
 0x101   :  { %81 = dma.vmem_to_hbm [thread:$0]  %s74_s21, 256, %s76_s24, [#allocation3], %s129_s25, %s129_s25, %s130_s26  }
 0x102   :  { %124 = dma.done.wait [#allocation3], 256  }
 0x103   :  { %125 = vsyncadd [#allocation3], 4294967040 }
 0x104   :  { %86 = vsyncpa [#allocation3], 1 }

</bundles_post_ra>
